<compile_context>
chip_gen: v6e
topology: v6e:2x2x1
jax: 0.10.0
libtpu: 0.0.40
codegen_flags: <defaults>
</compile_context>

<pallas_src>
import jax
import jax.numpy as jnp
from jax.experimental import pallas as pl
from jax.experimental.pallas import tpu as pltpu

_LANE = 128
_SUBLANE = 8


def _round_up(v, mult):
    return ((v + mult - 1) // mult) * mult


def _make_kernel(use_nonlinear):
    """Kernel body, statically specialized on whether the tanh term exists."""

    def kernel(x_ref, u_ref, w_ref, at_ref, bt_ref, xbar_ref, cmask_ref, o_ref):
        xb = xbar_ref[...]                                  # (1, NP) broadcasts
        dx = x_ref[...] - xb                                # (bt, NP)
        acc = jnp.dot(dx, at_ref[...], preferred_element_type=jnp.float32)
        acc = acc + jnp.dot(u_ref[...], bt_ref[...],
                            preferred_element_type=jnp.float32)
        if use_nonlinear:                                   # skipped when b2 == 0
            acc = acc + cmask_ref[...] * jnp.tanh(dx)
        o_ref[...] = acc + xb + w_ref[...]

    return kernel


class SystemRobotsPallas:
    """JAX/Pallas port of SystemRobots (forward pass only)."""

    def __init__(self, xbar, linear=True, mass=1.0):
        xbar = jnp.asarray(xbar, jnp.float32).reshape(-1)
        self.n_agents = xbar.shape[0] // 4
        self.n = 4 * self.n_agents
        self.m = 2 * self.n_agents
        self.h = 0.05
        self.mass = float(mass)
        self.k = 1.0
        self.b = 1.0
        self.b2 = 0.0 if linear else 0.5
        self.xbar = xbar

        eye_na = jnp.eye(self.n_agents, dtype=jnp.float32)
        b_blk = jnp.array([[0.0, 0.0],
                           [0.0, 0.0],
                           [1.0 / self.mass, 0.0],
                           [0.0, 1.0 / self.mass]], jnp.float32)
        self.B = jnp.kron(eye_na, b_blk) * self.h           # (n, m)

        a2_blk = jnp.array(
            [[0.0, 0.0, 1.0, 0.0],
             [0.0, 0.0, 0.0, 1.0],
             [-self.k / self.mass, 0.0, -self.b / self.mass, 0.0],
             [0.0, -self.k / self.mass, 0.0, -self.b / self.mass]],
            jnp.float32)
        self.A = (jnp.eye(self.n, dtype=jnp.float32)
                  + self.h * jnp.kron(eye_na, a2_blk))      # (n, n)

        self.mask_nl = jnp.tile(jnp.array([0.0, 0.0, 1.0, 1.0], jnp.float32),
                                self.n_agents)
        coeff = self.h * self.b2 / self.m

        # One-time lane-dense padded / pre-transposed constants.
        npad = _round_up(self.n, _LANE)
        mpad = _round_up(self.m, _LANE)
        self._npad, self._mpad = npad, mpad
        self._at_p = (jnp.zeros((npad, npad), jnp.float32)
                      .at[: self.n, : self.n].set(self.A.T))
        self._bt_p = (jnp.zeros((mpad, npad), jnp.float32)
                      .at[: self.m, : self.n].set(self.B.T))
        self._xbar_p = (jnp.zeros((1, npad), jnp.float32)
                        .at[0, : self.n].set(xbar))
        self._cmask_p = (jnp.zeros((1, npad), jnp.float32)
                         .at[0, : self.n].set(coeff * self.mask_nl))

        self._kernel = _make_kernel(self.b2 != 0.0)
        self.forward = jax.jit(self._forward)

    def _forward(self, t, x, u, w):
        del t  # t is unused by the torch dynamics as well
        x = jnp.asarray(x, jnp.float32)
        u = jnp.asarray(u, jnp.float32)
        w = jnp.asarray(w, jnp.float32)
        squeeze = x.ndim == 1
        x2, u2, w2 = jnp.atleast_2d(x), jnp.atleast_2d(u), jnp.atleast_2d(w)
        batch = x2.shape[0]

        bt = _SUBLANE
        bpad = _round_up(batch, bt)
        npad, mpad = self._npad, self._mpad

        xp = jnp.zeros((bpad, npad), jnp.float32).at[:batch, : self.n].set(x2)
        up = jnp.zeros((bpad, mpad), jnp.float32).at[:batch, : self.m].set(u2)
        wp = jnp.zeros((bpad, npad), jnp.float32).at[:batch, : self.n].set(w2)

        out = pl.pallas_call(
            self._kernel,
            out_shape=jax.ShapeDtypeStruct((bpad, npad), jnp.float32),
            grid_spec=pltpu.PrefetchScalarGridSpec(
                num_scalar_prefetch=0,
                grid=(bpad // bt,),
                in_specs=[
                    pl.BlockSpec((bt, npad), lambda i: (i, 0)),    # x tile
                    pl.BlockSpec((bt, mpad), lambda i: (i, 0)),    # u tile
                    pl.BlockSpec((bt, npad), lambda i: (i, 0)),    # w tile
                    pl.BlockSpec((npad, npad), lambda i: (0, 0)),  # A^T (resident)
                    pl.BlockSpec((mpad, npad), lambda i: (0, 0)),  # B^T (resident)
                    pl.BlockSpec((1, npad), lambda i: (0, 0)),     # xbar
                    pl.BlockSpec((1, npad), lambda i: (0, 0)),     # coeff * mask
                ],
                out_specs=pl.BlockSpec((bt, npad), lambda i: (i, 0)),
            ),
            compiler_params=pltpu.CompilerParams(
                dimension_semantics=("parallel",)),
        )(xp, up, wp, self._at_p, self._bt_p, self._xbar_p, self._cmask_p)

        x_ = out[:batch, : self.n]
        if squeeze:
            x_ = x_[0]
        return x_, x_

    # Pure-JAX reference of the torch forward (for the correctness check).
    def reference(self, t, x, u, w):
        del t
        dx = x - self.xbar
        coeff = self.h * self.b2 / self.m
        f = (dx @ self.A.T + coeff * self.mask_nl * jnp.tanh(dx)
             + u @ self.B.T + self.xbar)
        x_ = f + w
        return x_, x_

    # TODO(synk): distance_agents / distance_obstacle / h_barrier / h_agents /
    # h_obstacles are analysis helpers outside forward() and were not ported.


if __name__ == "__main__":
    key = jax.random.PRNGKey(0)
    k_xbar, k_x, k_u, k_w, k_xb, k_ub, k_wb = jax.random.split(key, 7)

    n_agents = 2
    n, m = 4 * n_agents, 2 * n_agents          # n = 8, m = 4 (as in the torch asserts)

    xbar = jax.random.normal(k_xbar, (n,), jnp.float32)
    sys = SystemRobotsPallas(xbar, linear=False, mass=1.0)   # nonlinear: b2 = 0.5

    # --- single state vector (matches the torch module's usage) ---
    x = jax.random.normal(k_x, (n,), jnp.float32)
    u = jax.random.normal(k_u, (m,), jnp.float32)
    w = jax.random.normal(k_w, (n,), jnp.float32)
    x_, y = sys.forward(0, x, u, w)
    jax.block_until_ready(x_)
    x_ref, _ = sys.reference(0, x, u, w)
    assert x_.shape == (n,)
    assert jnp.allclose(x_, x_ref, atol=1e-4, rtol=1e-4), "single-step mismatch"
    assert jnp.allclose(y, x_), "y must equal x_"

    # --- batched states (still one fused kernel call) ---
    batch = 8
    xb = jax.random.normal(k_xb, (batch, n), jnp.float32)
    ub = jax.random.normal(k_ub, (batch, m), jnp.float32)
    wb = jax.random.normal(k_wb, (batch, n), jnp.float32)
    xb_, yb = sys.forward(0, xb, ub, wb)
    jax.block_until_ready(xb_)
    xb_ref, _ = sys.reference(0, xb, ub, wb)
    assert xb_.shape == (batch, n)
    assert jnp.allclose(xb_, xb_ref, atol=1e-4, rtol=1e-4), "batched mismatch"

    print("KERNEL_OK")
</pallas_src>

<mosaic_0001>
module attributes {stable_mosaic.version = 11 : i64} {
  func.func @kernel(%arg0: i32, %arg1: memref<8x128xf32, #tpu.memory_space<vmem>>, %arg2: memref<8x128xf32, #tpu.memory_space<vmem>>, %arg3: memref<8x128xf32, #tpu.memory_space<vmem>>, %arg4: memref<128x128xf32, #tpu.memory_space<vmem>>, %arg5: memref<128x128xf32, #tpu.memory_space<vmem>>, %arg6: memref<1x128xf32, #tpu.memory_space<vmem>>, %arg7: memref<1x128xf32, #tpu.memory_space<vmem>>, %arg8: memref<8x128xf32, #tpu.memory_space<vmem>>) attributes {dimension_semantics = [#tpu.dimension_semantics<parallel>], iteration_bounds = array<i64: 1>, scalar_prefetch = 0 : i64, scratch_operands = 0 : i64, tpu.core_type = #tpu.core_type<tc>, window_params = [{transform_indices = @transform_0, window_bounds = array<i64: 8, 128>}, {transform_indices = @transform_1, window_bounds = array<i64: 8, 128>}, {transform_indices = @transform_2, window_bounds = array<i64: 8, 128>}, {pipeline_mode = #tpu.pipeline_mode<synchronous>, transform_indices = @transform_3, window_bounds = array<i64: 128, 128>}, {pipeline_mode = #tpu.pipeline_mode<synchronous>, transform_indices = @transform_4, window_bounds = array<i64: 128, 128>}, {pipeline_mode = #tpu.pipeline_mode<synchronous>, transform_indices = @transform_5, window_bounds = array<i64: 1, 128>}, {pipeline_mode = #tpu.pipeline_mode<synchronous>, transform_indices = @transform_6, window_bounds = array<i64: 1, 128>}, {transform_indices = @transform_7, window_bounds = array<i64: 8, 128>}]} {
    %c0 = arith.constant 0 : index
    %c0_0 = arith.constant 0 : index
    %0 = vector.load %arg6[%c0, %c0_0] : memref<1x128xf32, #tpu.memory_space<vmem>>, vector<1x128xf32>
    %c0_1 = arith.constant 0 : index
    %c0_2 = arith.constant 0 : index
    %1 = vector.load %arg1[%c0_1, %c0_2] : memref<8x128xf32, #tpu.memory_space<vmem>>, vector<8x128xf32>
    %2 = vector.broadcast %0 : vector<1x128xf32> to vector<8x128xf32>
    %3 = arith.subf %1, %2 : vector<8x128xf32>
    %c0_3 = arith.constant 0 : index
    %c0_4 = arith.constant 0 : index
    %4 = vector.load %arg4[%c0_3, %c0_4] : memref<128x128xf32, #tpu.memory_space<vmem>>, vector<128x128xf32>
    %cst = arith.constant dense<0.000000e+00> : vector<8x128xf32>
    %5 = tpu.matmul %3, %4, %cst {dimension_numbers = #tpu.dot_dimension_numbers<[1], [0], [0], [1], [0, 0, 1, 1], [], []>} : vector<8x128xf32>, vector<128x128xf32>, vector<8x128xf32> -> vector<8x128xf32>
    %c0_5 = arith.constant 0 : index
    %c0_6 = arith.constant 0 : index
    %6 = vector.load %arg2[%c0_5, %c0_6] : memref<8x128xf32, #tpu.memory_space<vmem>>, vector<8x128xf32>
    %c0_7 = arith.constant 0 : index
    %c0_8 = arith.constant 0 : index
    %7 = vector.load %arg5[%c0_7, %c0_8] : memref<128x128xf32, #tpu.memory_space<vmem>>, vector<128x128xf32>
    %cst_9 = arith.constant dense<0.000000e+00> : vector<8x128xf32>
    %8 = tpu.matmul %6, %7, %cst_9 {dimension_numbers = #tpu.dot_dimension_numbers<[1], [0], [0], [1], [0, 0, 1, 1], [], []>} : vector<8x128xf32>, vector<128x128xf32>, vector<8x128xf32> -> vector<8x128xf32>
    %9 = arith.addf %5, %8 : vector<8x128xf32>
    %c0_10 = arith.constant 0 : index
    %c0_11 = arith.constant 0 : index
    %10 = vector.load %arg7[%c0_10, %c0_11] : memref<1x128xf32, #tpu.memory_space<vmem>>, vector<1x128xf32>
    %11 = math.tanh %3 : vector<8x128xf32>
    %12 = vector.broadcast %10 : vector<1x128xf32> to vector<8x128xf32>
    %13 = arith.mulf %12, %11 : vector<8x128xf32>
    %14 = arith.addf %9, %13 : vector<8x128xf32>
    %15 = vector.broadcast %0 : vector<1x128xf32> to vector<8x128xf32>
    %16 = arith.addf %14, %15 : vector<8x128xf32>
    %c0_12 = arith.constant 0 : index
    %c0_13 = arith.constant 0 : index
    %17 = vector.load %arg3[%c0_12, %c0_13] : memref<8x128xf32, #tpu.memory_space<vmem>>, vector<8x128xf32>
    %18 = arith.addf %16, %17 : vector<8x128xf32>
    %c0_14 = arith.constant 0 : index
    %c0_15 = arith.constant 0 : index
    %19 = vector.load %arg8[%c0_14, %c0_15] : memref<8x128xf32, #tpu.memory_space<vmem>>, vector<8x128xf32>
    tpu.vector_store %arg8[%c0_14, %c0_15], %18 {strides = array<i32>} : memref<8x128xf32, #tpu.memory_space<vmem>>, vector<8x128xf32>,
    return
  }
  func.func @transform_0(%arg0: i32) -> (i32, i32) {
    %c0_i32 = arith.constant 0 : i32
    %c0_i32_0 = arith.constant 0 : i32
    return %arg0, %c0_i32 : i32, i32
  }
  func.func @transform_1(%arg0: i32) -> (i32, i32) {
    %c0_i32 = arith.constant 0 : i32
    %c0_i32_0 = arith.constant 0 : i32
    return %arg0, %c0_i32 : i32, i32
  }
  func.func @transform_2(%arg0: i32) -> (i32, i32) {
    %c0_i32 = arith.constant 0 : i32
    %c0_i32_0 = arith.constant 0 : i32
    return %arg0, %c0_i32 : i32, i32
  }
  func.func @transform_3(%arg0: i32) -> (i32, i32) {
    %c0_i32 = arith.constant 0 : i32
    %c0_i32_0 = arith.constant 0 : i32
    %c0_i32_1 = arith.constant 0 : i32
    return %c0_i32, %c0_i32_0 : i32, i32
  }
  func.func @transform_4(%arg0: i32) -> (i32, i32) {
    %c0_i32 = arith.constant 0 : i32
    %c0_i32_0 = arith.constant 0 : i32
    %c0_i32_1 = arith.constant 0 : i32
    return %c0_i32, %c0_i32_0 : i32, i32
  }
  func.func @transform_5(%arg0: i32) -> (i32, i32) {
    %c0_i32 = arith.constant 0 : i32
    %c0_i32_0 = arith.constant 0 : i32
    %c0_i32_1 = arith.constant 0 : i32
    return %c0_i32, %c0_i32_0 : i32, i32
  }
  func.func @transform_6(%arg0: i32) -> (i32, i32) {
    %c0_i32 = arith.constant 0 : i32
    %c0_i32_0 = arith.constant 0 : i32
    %c0_i32_1 = arith.constant 0 : i32
    return %c0_i32, %c0_i32_0 : i32, i32
  }
  func.func @transform_7(%arg0: i32) -> (i32, i32) {
    %c0_i32 = arith.constant 0 : i32
    %c0_i32_0 = arith.constant 0 : i32
    return %arg0, %c0_i32 : i32, i32
  }
}

</mosaic_0001>

<bundles_post_ra>
// kernel: _forward.1
= control target key start
LH: loop header
LB: loop body
LE: loop exit
PB: predicated region body
PF: predicated region fallthrough
CT: control target
= control target key end

     0   :  { %12 = vsyncpa [#allocation3], 0  ;;  %s518_s0 = inlined_call_operand.vmem [shape: f32[8,128], index: 0, kind: input, shape index: {}]   ;;  %s519_s1 = inlined_call_operand.vmem [shape: f32[8,128], index: 1, kind: input, shape index: {}]   ;;  %s520_s2 = inlined_call_operand.vmem [shape: f32[8,128], index: 2, kind: input, shape index: {}]   ;;  %s521_s3 = inlined_call_operand.hbm [shape: f32[128,128], index: 3, kind: input, shape index: {}]   ;;  %s522_s4 = inlined_call_operand.hbm [shape: f32[128,128], index: 4, kind: input, shape index: {}]   ;;  %s523_s5 = inlined_call_operand.vmem [shape: f32[1,128], index: 5, kind: input, shape index: {}]   ;;  %s524_s6 = inlined_call_operand.vmem [shape: f32[1,128], index: 6, kind: input, shape index: {}]   ;;  %s525_s7 = inlined_call_operand.vmem [shape: f32[8,128], index: 7, kind: output, shape index: {}]  }
   0x1   :  { %13 = vsyncpa [#allocation5], 0  ;;  %s414_s24 = smov [#allocation2]  }
   0x2   :  { %s25_s25 = sshll.u32 %s414_s24, 4  ;;  %s26_s25 = int_to_ptr.vmem [resolvable:$true] %s25_s25 }
   0x3   :  { %s378_s26 = scalar_lea.vmem %s26_s25, 2048  ;;  %p383_p1 = scmp.lt.s32.totalorder %s26_s25, %s26_s25 }
   0x4   :  { %p379_p0 = scmp.ne.s32.totalorder %s26_s25, %s378_s26  ;;  %p384_p2 = scmp.lt.s32.totalorder %s378_s26, %s378_s26 }
   0x6   :  { %p385_p3 = por %p384_p2, %p383_p1 }
   0x8   :  { %p386_p4 = pnand %p385_p3, %p379_p0 }
   0xa   :  { %389 = shalt.err (!%p386_p4)
}
   0xb   :  { %s415_s27 = smov 128   ;;  %s416_s28 = smov 8  }
   0xc   :  { %31 = dma.hbm_to_vmem [thread:$0]  %s521_s3, 2048, %s26_s25, [#allocation3], %s415_s27, %s415_s27, %s416_s28  }
   0xd   :  { %s417_s8 = smov [#allocation4]  }
   0xe   :  { %s37_s9 = sshll.u32 %s417_s8, 4  ;;  %s38_s9 = int_to_ptr.vmem [resolvable:$true] %s37_s9 }
   0xf   :  { %s398_s10 = scalar_lea.vmem %s38_s9, 2048  ;;  %p403_p6 = scmp.lt.s32.totalorder %s38_s9, %s38_s9 }
  0x10   :  { %p399_p5 = scmp.ne.s32.totalorder %s38_s9, %s398_s10  ;;  %p404_p7 = scmp.lt.s32.totalorder %s398_s10, %s398_s10 }
  0x12   :  { %p405_p8 = por %p404_p7, %p403_p6 }
  0x14   :  { %p406_p9 = pnand %p405_p8, %p399_p5 }
  0x16   :  { %409 = shalt.err (!%p406_p9)
}
  0x17   :  { %43 = dma.hbm_to_vmem [thread:$0]  %s522_s4, 2048, %s38_s9, [#allocation5], %s415_s27, %s415_s27, %s416_s28  }
  0x18   :  { %410 = dma.done.wait [#allocation3], 2048  }
  0x19   :  { %411 = vsyncadd [#allocation3], 4294965248 }
  0x1a   :  { %412 = dma.done.wait [#allocation5], 2048  }
  0x1b   :  { %413 = vsyncadd [#allocation5], 4294965248  ;;  %v418_v0 = vmov 0.0   ;;  %vm419_vm0 = vmmov 0   ;;  %v95_v1 = vld [vmem:[#allocation4 + $0x78] sm:$0xff]  ;;  %v94_v3 = vld [vmem:[#allocation4 + $0x70] sm:$0xff] }
  0x1c   :  { %292 = vmatprep.subr.mxu0 %v418_v0  ;;  %327 = vmatprep.subr.mxu1 %v418_v0  ;;  %v78_v2 = vld [vmem:[#allocation2 + $0x78] sm:$0xff]  ;;  %v77_v4 = vld [vmem:[#allocation2 + $0x70] sm:$0xff]  ;;  %v93_v5 = vld [vmem:[#allocation4 + $0x68] sm:$0xff] }
  0x1d   :  { %324 = vmatprep.mubr.msk.f32.mxu0 %vm419_vm0, %v418_v0  ;;  %359 = vmatprep.mubr.msk.f32.mxu1 %vm419_vm0, %v418_v0  ;;  %v76_v6 = vld [vmem:[#allocation2 + $0x68] sm:$0xff]  ;;  %v92_v7 = vld [vmem:[#allocation4 + $0x60] sm:$0xff]  ;;  %v91_v9 = vld [vmem:[#allocation4 + $0x58] sm:$0xff] }
  0x1e   :  { %293 = vmatpush3.msra.mxu0 %v95_v1  ;;  %328 = vmatpush3.msra.mxu1 %v78_v2  ;;  %v75_v8 = vld [vmem:[#allocation2 + $0x60] sm:$0xff]  ;;  %v74_v10 = vld [vmem:[#allocation2 + $0x58] sm:$0xff]  ;;  %v90_v11 = vld [vmem:[#allocation4 + $0x50] sm:$0xff] }
  0x1f   :  { %294 = vmatprep.subr.mxu0 %v418_v0  ;;  %329 = vmatprep.subr.mxu1 %v418_v0  ;;  %v73_v12 = vld [vmem:[#allocation2 + $0x50] sm:$0xff]  ;;  %v89_v13 = vld [vmem:[#allocation4 + $0x48] sm:$0xff]  ;;  %v88_v15 = vld [vmem:[#allocation4 + $0x40] sm:$0xff] }
  0x20   :  { %295 = vmatpush3.msra.mxu0 %v94_v3  ;;  %330 = vmatpush3.msra.mxu1 %v77_v4  ;;  %v72_v14 = vld [vmem:[#allocation2 + $0x48] sm:$0xff]  ;;  %v71_v16 = vld [vmem:[#allocation2 + $0x40] sm:$0xff]  ;;  %v87_v17 = vld [vmem:[#allocation4 + $0x38] sm:$0xff] }
  0x21   :  { %296 = vmatprep.subr.mxu0 %v418_v0  ;;  %331 = vmatprep.subr.mxu1 %v418_v0  ;;  %v70_v18 = vld [vmem:[#allocation2 + $0x38] sm:$0xff]  ;;  %v86_v19 = vld [vmem:[#allocation4 + $0x30] sm:$0xff]  ;;  %v85_v21 = vld [vmem:[#allocation4 + $0x28] sm:$0xff] }
  0x22   :  { %297 = vmatpush3.msra.mxu0 %v93_v5  ;;  %332 = vmatpush3.msra.mxu1 %v76_v6  ;;  %v69_v20 = vld [vmem:[#allocation2 + $0x30] sm:$0xff]  ;;  %v68_v22 = vld [vmem:[#allocation2 + $0x28] sm:$0xff]  ;;  %v84_v23 = vld [vmem:[#allocation4 + $0x20] sm:$0xff] }
  0x23   :  { %298 = vmatprep.subr.mxu0 %v418_v0  ;;  %333 = vmatprep.subr.mxu1 %v418_v0  ;;  %v67_v24 = vld [vmem:[#allocation2 + $0x20] sm:$0xff]  ;;  %v83_v25 = vld [vmem:[#allocation4 + $0x18] sm:$0xff]  ;;  %v82_v27 = vld [vmem:[#allocation4 + $0x10] sm:$0xff] }
  0x24   :  { %299 = vmatpush3.msra.mxu0 %v92_v7  ;;  %334 = vmatpush3.msra.mxu1 %v75_v8  ;;  %v66_v26 = vld [vmem:[#allocation2 + $0x18] sm:$0xff]  ;;  %v65_v28 = vld [vmem:[#allocation2 + $0x10] sm:$0xff]  ;;  %v256_v29 = vld [vmem:[%s523_s5] ss:$0 sm:$0xff] }
  0x25   :  { %300 = vmatprep.subr.mxu0 %v418_v0  ;;  %335 = vmatprep.subr.mxu1 %v418_v0  ;;  %v55_v30 = vld [vmem:[%s518_s0] sm:$0xff]  ;;  %v81_v31 = vld [vmem:[#allocation4 + $0x8] sm:$0xff] }
  0x26   :  { %301 = vmatpush3.msra.mxu0 %v91_v9  ;;  %336 = vmatpush3.msra.mxu1 %v74_v10  ;;  %v64_v32 = vld [vmem:[#allocation2 + $0x8] sm:$0xff]  ;;  %v80_v33 = vld [vmem:[#allocation4] sm:$0xff]  ;;  %v62_v35 = vsub.f32 %v55_v30, %v256_v29 }
  0x27   :  { %302 = vmatprep.subr.mxu0 %v418_v0  ;;  %337 = vmatprep.subr.mxu1 %v418_v0  ;;  %v63_v34 = vld [vmem:[#allocation2] sm:$0xff] }
  0x28   :  { %303 = vmatpush3.msra.mxu0 %v90_v11  ;;  %338 = vmatpush3.msra.mxu1 %v73_v12  ;;  %v79_v36 = vld [vmem:[%s519_s1] sm:$0xff]  ;;  %368 = vtanh.f32 %v62_v35 }
  0x29   :  { %304 = vmatprep.subr.mxu0 %v418_v0  ;;  %339 = vmatprep.subr.mxu1 %v418_v0  ;;  %v257_v38 = vld [vmem:[%s524_s6] ss:$0 sm:$0xff] }
  0x2a   :  { %305 = vmatpush3.msra.mxu0 %v89_v13  ;;  %340 = vmatpush3.msra.mxu1 %v72_v14  ;;  %v247_v46 = vld [vmem:[%s520_s2] sm:$0xff] }
  0x2b   :  { %306 = vmatprep.subr.mxu0 %v418_v0  ;;  %341 = vmatprep.subr.mxu1 %v418_v0 }
  0x2c   :  { %307 = vmatpush3.msra.mxu0 %v88_v15  ;;  %342 = vmatpush3.msra.mxu1 %v71_v16 }
  0x2d   :  { %308 = vmatprep.subr.mxu0 %v418_v0  ;;  %343 = vmatprep.subr.mxu1 %v418_v0 }
  0x2e   :  { %309 = vmatpush3.msra.mxu0 %v87_v17  ;;  %344 = vmatpush3.msra.mxu1 %v70_v18 }
  0x2f   :  { %310 = vmatprep.subr.mxu0 %v418_v0  ;;  %345 = vmatprep.subr.mxu1 %v418_v0 }
  0x30   :  { %311 = vmatpush3.msra.mxu0 %v86_v19  ;;  %346 = vmatpush3.msra.mxu1 %v69_v20 }
  0x31   :  { %312 = vmatprep.subr.mxu0 %v418_v0  ;;  %347 = vmatprep.subr.mxu1 %v418_v0 }
  0x32   :  { %313 = vmatpush3.msra.mxu0 %v85_v21  ;;  %348 = vmatpush3.msra.mxu1 %v68_v22 }
  0x33   :  { %314 = vmatprep.subr.mxu0 %v418_v0  ;;  %349 = vmatprep.subr.mxu1 %v418_v0 }
  0x34   :  { %315 = vmatpush3.msra.mxu0 %v84_v23  ;;  %350 = vmatpush3.msra.mxu1 %v67_v24 }
  0x35   :  { %316 = vmatprep.subr.mxu0 %v418_v0  ;;  %351 = vmatprep.subr.mxu1 %v418_v0  ;;  %v369_v37 = vpop.eup %368 }
  0x36   :  { %317 = vmatpush3.msra.mxu0 %v83_v25  ;;  %352 = vmatpush3.msra.mxu1 %v66_v26  ;;  %v244_v39 = vmul.f32 %v369_v37, %v257_v38 }
  0x37   :  { %318 = vmatprep.subr.mxu0 %v418_v0  ;;  %353 = vmatprep.subr.mxu1 %v418_v0 }
  0x38   :  { %319 = vmatpush3.msra.mxu0 %v82_v27  ;;  %354 = vmatpush3.msra.mxu1 %v65_v28 }
  0x39   :  { %320 = vmatprep.subr.mxu0 %v418_v0  ;;  %355 = vmatprep.subr.mxu1 %v418_v0 }
  0x3a   :  { %321 = vmatpush3.msra.mxu0 %v81_v31  ;;  %356 = vmatpush3.msra.mxu1 %v64_v32 }
  0x3b   :  { %322 = vmatprep.subr.mxu0 %v418_v0  ;;  %357 = vmatprep.subr.mxu1 %v418_v0 }
  0x3c   :  { %323 = vmatpush3.msra.mxu0 %v80_v33  ;;  %358 = vmatpush3.msra.mxu1 %v63_v34 }
  0x3d   :  { %325 = vmatmul.mubr.f32.vlgmr.msra.gmra.mxu0 %v79_v36  ;;  %360 = vmatmul.mubr.f32.vlgmr.msra.gmra.mxu1 %v62_v35 }
  0xfd   :  { %v162_v40 = vpop.f32.mrf.mxu0  ;;  %v232_v41 = vpop.f32.mrf.mxu1 }
  0xfe   :  { %v233_v42 = vadd.f32 %v232_v41, %v162_v40 }
  0xff   :  { %v326_v43 = vpop.f32.mrf.mxu0  ;;  %v361_v44 = vpop.f32.mrf.mxu1 }
 0x100   :  { %v245_v45 = vadd.f32 %v244_v39, %v233_v42 }
 0x102   :  { %v246_v47 = vadd.f32 %v256_v29, %v245_v45 }
 0x104   :  { %v248_v48 = vadd.f32 %v247_v46, %v246_v47 }
 0x106   :  { %249 = vst [vmem:[%s525_s7] sm:$0xff] %v248_v48 }
 0x107   :  { %254 = vsyncpa [#allocation3], 1 }
 0x108   :  { %255 = vsyncpa [#allocation5], 1 }

</bundles_post_ra>
